<compile_context>
chip_gen: v7x
topology: tpu7x:2x2x1
jax: 0.10.0
libtpu: 0.0.40
codegen_flags: <defaults>
</compile_context>

<pallas_src>
import jax
import jax.numpy as jnp
from jax.experimental import pallas as pl
from jax.experimental.pallas import tpu as pltpu

_SUBLANE = 8


def _round_up(x, m):
    return (x + m - 1) // m * m


def _cdiv(a, b):
    return (a + b - 1) // b


def _phoc_mlp_kernel(x_ref, w1_ref, b1_ref, w2_ref, b2_ref, o_ref):
    # x_ref:  (TB, P) input dtype    w1_ref: (P, N) bf16    b1_ref: (1, N) f32
    # w2_ref: (N, N) bf16            b2_ref: (1, N) f32     o_ref:  (TB, N) out dtype
    x = x_ref[...].astype(jnp.bfloat16)
    h = jnp.dot(x, w1_ref[...], preferred_element_type=jnp.float32)
    h = jnp.maximum(h + b1_ref[...], 0.0)
    y = jnp.dot(h.astype(jnp.bfloat16), w2_ref[...],
                preferred_element_type=jnp.float32)
    o_ref[...] = (y + b2_ref[...]).astype(o_ref.dtype)


def _phoc_forward_pallas(x, w1_bf16, b1_row, w2_bf16, b2_row, *, batch_tile):
    B, P = x.shape
    N = w1_bf16.shape[1]

    # Defensive: batch_tile a multiple of 8, capped so double-buffered x/out
    # tiles stay comfortably inside v7x's 32 MiB default scoped VMEM.
    tb_cap = max(_SUBLANE, _round_up(min(int(batch_tile), 8192), _SUBLANE))
    num_tiles = max(1, _cdiv(B, tb_cap))
    # v7x has 2 TensorCores: give a medium batch at least 2 parallel tiles.
    if num_tiles == 1 and B >= 512:
        num_tiles = 2
    # Balanced tile size (avoids a nearly-empty trailing tile, e.g. B=1032).
    TB = _round_up(_cdiv(B, num_tiles), _SUBLANE)
    num_tiles = _cdiv(B, TB)

    return pl.pallas_call(
        _phoc_mlp_kernel,
        out_shape=jax.ShapeDtypeStruct((B, N), x.dtype),
        grid=(num_tiles,),
        in_specs=[
            pl.BlockSpec((TB, P), lambda i: (i, 0)),   # x: streams per tile
            pl.BlockSpec((P, N), lambda i: (0, 0)),    # w1: VMEM-resident
            pl.BlockSpec((1, N), lambda i: (0, 0)),    # b1
            pl.BlockSpec((N, N), lambda i: (0, 0)),    # w2
            pl.BlockSpec((1, N), lambda i: (0, 0)),    # b2
        ],
        out_specs=pl.BlockSpec((TB, N), lambda i: (i, 0)),
        compiler_params=pltpu.CompilerParams(
            dimension_semantics=("parallel",),
        ),
    )(x, w1_bf16, b1_row, w2_bf16, b2_row)


def _init_linear(key, fan_in, fan_out, dtype=jnp.float32):
    """Mimics torch.nn.Linear default init (uniform +/- 1/sqrt(fan_in)).
    Weight is returned as (fan_in, fan_out) so the kernel computes x @ W."""
    kw, kb = jax.random.split(key)
    bound = 1.0 / jnp.sqrt(fan_in)
    w = jax.random.uniform(kw, (fan_in, fan_out), dtype, minval=-bound, maxval=bound)
    b = jax.random.uniform(kb, (fan_out,), dtype, minval=-bound, maxval=bound)
    return w, b


class PHOCEncoderPallas:
    """y = relu(x @ W1 + b1) @ W2 + b2  (matches torch PHOCEncoder.forward).

    # TODO(synk): `batch.to(self.device)` is a framework device move with no
    # Pallas equivalent; inputs are assumed already on the TPU.
    """

    def __init__(self, key, phoc_vector_size, node_size):
        k1, k2 = jax.random.split(key)
        w1, b1 = _init_linear(k1, phoc_vector_size, node_size)
        w2, b2 = _init_linear(k2, node_size, node_size)
        # f32 masters (reference / tiny-batch fallback).
        self.w1, self.b1, self.w2, self.b2 = w1, b1, w2, b2
        # Kernel-ready buffers, built ONCE (hoisted out of the per-call path).
        self.w1_bf16 = w1.astype(jnp.bfloat16)
        self.w2_bf16 = w2.astype(jnp.bfloat16)
        self.b1_row = b1.astype(jnp.float32).reshape(1, -1)
        self.b2_row = b2.astype(jnp.float32).reshape(1, -1)

    def reference(self, x):
        return jnp.maximum(x @ self.w1 + self.b1, 0.0) @ self.w2 + self.b2

    def __call__(self, x, *, batch_tile=4096, force_pallas=False,
                 small_batch_threshold=64):
        B = x.shape[0]
        if B <= small_batch_threshold and not force_pallas:
            # Sub-microsecond body: launch overhead dominates, let XLA fuse it.
            return self.reference(x).astype(x.dtype)
        return _phoc_forward_pallas(
            x, self.w1_bf16, self.b1_row, self.w2_bf16, self.b2_row,
            batch_tile=batch_tile)


if __name__ == "__main__":
    phoc_vector_size = 64
    node_size = 32

    key = jax.random.PRNGKey(0)
    k_model, kx1, kx2 = jax.random.split(key, 3)

    enc = PHOCEncoderPallas(k_model, phoc_vector_size, node_size)

    # Path 1: small batch, single grid tile (Pallas path forced).
    x_small = jax.random.normal(kx1, (8, phoc_vector_size), jnp.float32)
    out_small = jax.block_until_ready(enc(x_small, force_pallas=True))
    assert out_small.shape == (8, node_size)
    # bf16 MXU operands -> loose tolerance vs f32 reference.
    assert jnp.allclose(out_small, enc.reference(x_small), atol=5e-2, rtol=5e-2)

    # Path 2: multi-tile grid with an uneven trailing tile (B=20, TB=8).
    x_big = jax.random.normal(kx2, (20, phoc_vector_size), jnp.float32)
    out_big = jax.block_until_ready(enc(x_big, batch_tile=8, force_pallas=True))
    assert out_big.shape == (20, node_size)
    assert jnp.allclose(out_big, enc.reference(x_big), atol=5e-2, rtol=5e-2)

    # Path 3: tiny-batch jnp fallback (no Pallas launch), exact vs reference.
    out_fb = jax.block_until_ready(enc(x_small))
    assert jnp.allclose(out_fb, enc.reference(x_small), atol=1e-5, rtol=1e-5)

    print("KERNEL_OK")
</pallas_src>

<mosaic_0001>
module attributes {stable_mosaic.version = 11 : i64} {
  func.func @_phoc_mlp_kernel(%arg0: i32, %arg1: memref<8x64xf32, #tpu.memory_space<vmem>>, %arg2: memref<64x32xbf16, #tpu.memory_space<vmem>>, %arg3: memref<1x32xf32, #tpu.memory_space<vmem>>, %arg4: memref<32x32xbf16, #tpu.memory_space<vmem>>, %arg5: memref<1x32xf32, #tpu.memory_space<vmem>>, %arg6: memref<8x32xf32, #tpu.memory_space<vmem>>) attributes {dimension_semantics = [#tpu.dimension_semantics<parallel>], iteration_bounds = array<i64: 1>, scalar_prefetch = 0 : i64, scratch_operands = 0 : i64, tpu.core_type = #tpu.core_type<tc>, window_params = [{transform_indices = @transform_0, window_bounds = array<i64: 8, 64>}, {pipeline_mode = #tpu.pipeline_mode<synchronous>, transform_indices = @transform_1, window_bounds = array<i64: 64, 32>}, {pipeline_mode = #tpu.pipeline_mode<synchronous>, transform_indices = @transform_2, window_bounds = array<i64: 1, 32>}, {pipeline_mode = #tpu.pipeline_mode<synchronous>, transform_indices = @transform_3, window_bounds = array<i64: 32, 32>}, {pipeline_mode = #tpu.pipeline_mode<synchronous>, transform_indices = @transform_4, window_bounds = array<i64: 1, 32>}, {transform_indices = @transform_5, window_bounds = array<i64: 8, 32>}]} {
    %c0 = arith.constant 0 : index
    %c0_0 = arith.constant 0 : index
    %0 = vector.load %arg1[%c0, %c0_0] : memref<8x64xf32, #tpu.memory_space<vmem>>, vector<8x64xf32>
    %1 = arith.truncf %0 : vector<8x64xf32> to vector<8x64xbf16>
    %c0_1 = arith.constant 0 : index
    %c0_2 = arith.constant 0 : index
    %2 = vector.load %arg2[%c0_1, %c0_2] : memref<64x32xbf16, #tpu.memory_space<vmem>>, vector<64x32xbf16>
    %cst = arith.constant dense<0.000000e+00> : vector<8x32xf32>
    %3 = tpu.matmul %1, %2, %cst {dimension_numbers = #tpu.dot_dimension_numbers<[1], [0], [0], [1], [0, 0, 1, 1], [], []>} : vector<8x64xbf16>, vector<64x32xbf16>, vector<8x32xf32> -> vector<8x32xf32>
    %c0_3 = arith.constant 0 : index
    %c0_4 = arith.constant 0 : index
    %4 = vector.load %arg3[%c0_3, %c0_4] : memref<1x32xf32, #tpu.memory_space<vmem>>, vector<1x32xf32>
    %5 = vector.broadcast %4 : vector<1x32xf32> to vector<8x32xf32>
    %6 = arith.addf %3, %5 : vector<8x32xf32>
    %cst_5 = arith.constant 0.000000e+00 : f32
    %7 = vector.broadcast %cst_5 : f32 to vector<8x32xf32>
    %8 = arith.maximumf %6, %7 : vector<8x32xf32>
    %9 = arith.truncf %8 : vector<8x32xf32> to vector<8x32xbf16>
    %c0_6 = arith.constant 0 : index
    %c0_7 = arith.constant 0 : index
    %10 = vector.load %arg4[%c0_6, %c0_7] : memref<32x32xbf16, #tpu.memory_space<vmem>>, vector<32x32xbf16>
    %cst_8 = arith.constant dense<0.000000e+00> : vector<8x32xf32>
    %11 = tpu.matmul %9, %10, %cst_8 {dimension_numbers = #tpu.dot_dimension_numbers<[1], [0], [0], [1], [0, 0, 1, 1], [], []>} : vector<8x32xbf16>, vector<32x32xbf16>, vector<8x32xf32> -> vector<8x32xf32>
    %c0_9 = arith.constant 0 : index
    %c0_10 = arith.constant 0 : index
    %12 = vector.load %arg5[%c0_9, %c0_10] : memref<1x32xf32, #tpu.memory_space<vmem>>, vector<1x32xf32>
    %13 = vector.broadcast %12 : vector<1x32xf32> to vector<8x32xf32>
    %14 = arith.addf %11, %13 : vector<8x32xf32>
    %c0_11 = arith.constant 0 : index
    %c0_12 = arith.constant 0 : index
    %15 = vector.load %arg6[%c0_11, %c0_12] : memref<8x32xf32, #tpu.memory_space<vmem>>, vector<8x32xf32>
    tpu.vector_store %arg6[%c0_11, %c0_12], %14 {strides = array<i32>} : memref<8x32xf32, #tpu.memory_space<vmem>>, vector<8x32xf32>,
    return
  }
  func.func @transform_0(%arg0: i32) -> (i32, i32) {
    %c0_i32 = arith.constant 0 : i32
    %c0_i32_0 = arith.constant 0 : i32
    return %arg0, %c0_i32 : i32, i32
  }
  func.func @transform_1(%arg0: i32) -> (i32, i32) {
    %c0_i32 = arith.constant 0 : i32
    %c0_i32_0 = arith.constant 0 : i32
    %c0_i32_1 = arith.constant 0 : i32
    return %c0_i32, %c0_i32_0 : i32, i32
  }
  func.func @transform_2(%arg0: i32) -> (i32, i32) {
    %c0_i32 = arith.constant 0 : i32
    %c0_i32_0 = arith.constant 0 : i32
    %c0_i32_1 = arith.constant 0 : i32
    return %c0_i32, %c0_i32_0 : i32, i32
  }
  func.func @transform_3(%arg0: i32) -> (i32, i32) {
    %c0_i32 = arith.constant 0 : i32
    %c0_i32_0 = arith.constant 0 : i32
    %c0_i32_1 = arith.constant 0 : i32
    return %c0_i32, %c0_i32_0 : i32, i32
  }
  func.func @transform_4(%arg0: i32) -> (i32, i32) {
    %c0_i32 = arith.constant 0 : i32
    %c0_i32_0 = arith.constant 0 : i32
    %c0_i32_1 = arith.constant 0 : i32
    return %c0_i32, %c0_i32_0 : i32, i32
  }
  func.func @transform_5(%arg0: i32) -> (i32, i32) {
    %c0_i32 = arith.constant 0 : i32
    %c0_i32_0 = arith.constant 0 : i32
    return %arg0, %c0_i32 : i32, i32
  }
}

</mosaic_0001>

<bundles_post_ra>
// kernel: tpu_custom_call.1
= control target key start
LH: loop header
LB: loop body
LE: loop exit
PB: predicated region body
PF: predicated region fallthrough
CT: control target
= control target key end

     0   :  { %v262_v1 = vmov 0.0   ;;  %vm263_vm0 = vmmov 0   ;;  %s334_s0 = inlined_call_operand.vmem [shape: f32[8,64], index: 0, kind: input, shape index: {}]   ;;  %s335_s1 = inlined_call_operand.vmem [shape: bf16[64,32], index: 1, kind: input, shape index: {}]   ;;  %s336_s2 = inlined_call_operand.vmem [shape: f32[1,32], index: 2, kind: input, shape index: {}]   ;;  %s337_s3 = inlined_call_operand.vmem [shape: bf16[32,32], index: 3, kind: input, shape index: {}]   ;;  %s338_s4 = inlined_call_operand.vmem [shape: f32[1,32], index: 4, kind: input, shape index: {}]   ;;  %s339_s5 = inlined_call_operand.hbm [shape: f32[8,32], index: 5, kind: output, shape index: {}]  }
   0x1   :  { %v232_v0 = vld [vmem:[%s335_s1] sm:$0xff]   ;;  %209 = vmatprep.subr.bf16.mxu0 %v262_v1  ;;  %221 = vmatprep.subr.bf16.mxu1 %v262_v1  ;;  %v233_v2 = vld [vmem:[%s335_s1 + $0x8] sm:$0xff]   ;;  %v234_v3 = vld [vmem:[%s335_s1 + $0x10] sm:$0xff]  }
   0x2   :  { %210 = vmatpush3.bf16.msra.mxu0 %v232_v0  ;;  %217 = vmatprep.mubr.msk.bf16.mxu0 %vm263_vm0, %v262_v1 }
   0x3   :  { %211 = vmatprep.subr.bf16.mxu0 %v262_v1  ;;  %225 = vmatprep.mubr.msk.bf16.mxu1 %vm263_vm0, %v262_v1 }
   0x6   :  { %212 = vmatpush3.bf16.msra.mxu0 %v233_v2 }
   0x7   :  { %10 = vsyncpa [#allocation3], 0  ;;  %213 = vmatprep.subr.bf16.mxu0 %v262_v1  ;;  %v235_v4 = vld [vmem:[%s335_s1 + $0x18] sm:$0xff]   ;;  %v22_v5 = vld [vmem:[%s334_s0] sm:$0xff]  ;;  %vm63_vm1 = vcmask 523264   ;;  %vm132_vm2 = vcmask 261120  }
   0x8   :  { %v23_v6 = vpack.c.bf16 %v22_v5, %v22_v5  ;;  %v236_v7 = vld [vmem:[%s337_s3] sm:$0xff]   ;;  %v237_v8 = vld [vmem:[%s337_s3 + $0x8] sm:$0xff]   ;;  %s264_s9 = smov [#allocation2]  }
   0x9   :  { %222 = vmatpush3.bf16.msra.mxu1 %v236_v7  ;;  %v191_v9 = vld [vmem:[%s336_s2] ss:$0 sm:$0xff]  ;;  %s183_s3 = sshll.u32 %s264_s9, 4  ;;  %s184_s3 = int_to_ptr.vmem [resolvable:$true] %s183_s3 }
   0xa   :  { %214 = vmatpush3.bf16.msra.mxu0 %v234_v3  ;;  %223 = vmatprep.subr.bf16.mxu1 %v262_v1  ;;  %v197_v17 = vld [vmem:[%s338_s4] ss:$0 sm:$0xff]  ;;  %s238_s2 = scalar_lea.vmem %s184_s3, 128  ;;  %p243_p1 = scmp.lt.s32.totalorder %s184_s3, %s184_s3 }
   0xb   :  { %215 = vmatprep.subr.bf16.mxu0 %v262_v1  ;;  %p239_p0 = scmp.ne.s32.totalorder %s184_s3, %s238_s2  ;;  %p244_p2 = scmp.lt.s32.totalorder %s238_s2, %s238_s2 }
   0xd   :  { %224 = vmatpush3.bf16.msra.mxu1 %v237_v8  ;;  %p245_p3 = por %p244_p2, %p243_p1 }
   0xe   :  { %216 = vmatpush3.bf16.msra.mxu0 %v235_v4 }
   0xf   :  { %p246_p4 = pnand %p245_p3, %p239_p0 }
  0x11   :  { %218 = vmatmul.mubr.msk.bf16.vlgmr.msra.gmra.mrb[0].mxu0 %vm63_vm1, %v23_v6 }
  0xe4   :  { %v101_v10 = vpop.f32.mrb[0].mxu0 }
  0xe5   :  { %v102_v11 = vadd.f32 %v191_v9, %v101_v10  ;;  %v219_v12 = vpop.f32.mrb[1].mxu0 }
  0xe6   :  { %v104_v13 = vpop.f32.mrb[2].mxu0 }
  0xe7   :  { %v107_v14 = vmax.f32 %v102_v11, 0.0  ;;  %v220_v15 = vpop.f32.mrb[3].mxu0 }
  0xe9   :  { %v108_v16 = vpack.c.bf16 %v107_v14, %v107_v14 }
  0xeb   :  { %226 = vmatmul.mubr.msk.bf16.vlgmr.msra.gmra.mrb[0].mxu1 %vm132_vm2, %v108_v16 }
 0x1be   :  { %v170_v18 = vpop.f32.mrb[0].mxu1 }
 0x1bf   :  { %v171_v19 = vadd.f32 %v197_v17, %v170_v18  ;;  %v227_v20 = vpop.f32.mrb[1].mxu1 }
 0x1c0   :  { %v173_v21 = vpop.f32.mrb[2].mxu1 }
 0x1c1   :  { %176 = vst.msk [vmem:[#allocation2] sm:$0xff] %vm132_vm2, %v171_v19  ;;  %v228_v22 = vpop.f32.mrb[3].mxu1 }
 0x1c2   :  { %249 = shalt.err (!%p246_p4)
}
 0x1c3   :  { %s250_s4 = scalar_lea.hbm %s339_s5, 128 }
 0x1c4   :  { %p251_p5 = scmp.ne.s32.totalorder %s339_s5, %s250_s4  ;;  %p254_p6 = scmp.lt.u32.totalorder %s250_s4, %s339_s5 }
 0x1c6   :  { %p256_p7 = pnand %p254_p6, %p251_p5 }
 0x1c8   :  { %259 = shalt.err (!%p256_p7)
}
 0x1c9   :  { %186 = dma.vmem_to_hbm [thread:$0]  %s184_s3, 128, %s339_s5, [#allocation3]  }
 0x1ca   :  { %260 = dma.done.wait [#allocation3], 128  }
 0x1cb   :  { %261 = vsyncadd [#allocation3], 4294967168 }
 0x1cc   :  { %190 = vsyncpa [#allocation3], 1 }

</bundles_post_ra>
